<compile_context>
chip_gen: v6e
topology: v6e:2x2x1
jax: 0.10.0
libtpu: 0.0.40
codegen_flags: <defaults>
</compile_context>

<pallas_src>
import functools

import jax
import jax.numpy as jnp
from jax.experimental import pallas as pl
from jax.experimental.pallas import tpu as pltpu


def _blocks_encoder_kernel(x_ref, w_ref, b_ref, o_ref, *, num_blocks, d_out):
    """One grid step (or the whole problem when gridless).

    x_ref: (TB, D_in)                     -- input tile (dropout = identity in eval)
    w_ref: (D_in, num_blocks * D_out)     -- fused, pre-transposed weights (resident)
    b_ref: (1, num_blocks * D_out)        -- fused biases (broadcast over rows)
    o_ref: (TB, num_blocks * D_out)       -- concatenated per-block softmaxes
    """
    # Single MXU matmul for all blocks (N = num_blocks * D_out).
    logits = (
        jnp.dot(x_ref[...], w_ref[...], preferred_element_type=jnp.float32)
        + b_ref[...]
    )

    # Per-block numerically-stable softmax on static 128-lane column slices.
    # Static Python loop -> fully unrolled; each slice stored directly
    # (lane-dense, vreg-aligned) -- no jnp.concatenate / repack.
    for b in range(num_blocks):
        lo = b * d_out
        sl = logits[:, lo:lo + d_out]
        m = jnp.max(sl, axis=-1, keepdims=True)
        e = jnp.exp(sl - m)
        denom = jnp.sum(e, axis=-1, keepdims=True)
        # Exact reciprocal to stay within the 1e-5 self-test tolerance.
        o_ref[:, lo:lo + d_out] = (e * pl.reciprocal(denom, approx=False)).astype(
            o_ref.dtype
        )


def fuse_params(weights, biases):
    """One-time parameter fusion (call at init/load time, NOT per forward call).

    weights: (num_blocks, D_in, D_out)  (torch Linear weight, already transposed)
    biases:  (num_blocks, D_out)
    Column order of the fused slab matches torch.cat(dim=-1): c = b*D_out + j.
    """
    num_blocks, d_in, d_out = weights.shape
    w_fused = jnp.asarray(weights).transpose(1, 0, 2).reshape(d_in, num_blocks * d_out)
    b_fused = jnp.asarray(biases).reshape(1, num_blocks * d_out)
    return w_fused, b_fused


@functools.partial(jax.jit, static_argnames=("num_blocks", "d_out", "block_b"))
def blocks_encoder(x, w_fused, b_fused, *, num_blocks, d_out, block_b=512):
    """
    x:       (B, D_in)                       float32
    w_fused: (D_in, num_blocks * D_out)      float32  (from fuse_params, computed once)
    b_fused: (1, num_blocks * D_out)         float32
    returns: (B, num_blocks * D_out)         float32
    """
    B, D_in = x.shape
    N = num_blocks * d_out

    kernel = functools.partial(
        _blocks_encoder_kernel, num_blocks=num_blocks, d_out=d_out
    )
    itemsize = jnp.dtype(x.dtype).itemsize
    cost = pl.CostEstimate(
        flops=2 * B * D_in * N,
        transcendentals=B * N,
        bytes_accessed=(x.size + w_fused.size + b_fused.size + B * N) * itemsize,
    )

    if B <= block_b:
        # Small B: no grid -- whole problem (<100 KiB) lives in VMEM; avoids
        # per-step pipeline overhead entirely.
        return pl.pallas_call(
            kernel,
            out_shape=jax.ShapeDtypeStruct((B, N), x.dtype),
            in_specs=[
                pl.BlockSpec(memory_space=pltpu.MemorySpace.VMEM),  # x
                pl.BlockSpec(memory_space=pltpu.MemorySpace.VMEM),  # fused W
                pl.BlockSpec(memory_space=pltpu.MemorySpace.VMEM),  # fused bias
            ],
            out_specs=pl.BlockSpec(memory_space=pltpu.MemorySpace.VMEM),
            cost_estimate=cost,
        )(x, w_fused, b_fused)

    # Large B: 1-D "parallel" grid over B restores DMA/compute overlap and
    # shards across TCs on v7x. Fused W/bias stay resident (index_map -> (0,0)).
    # block_b rows ~ block_b*(D_in+N)*4 bytes of double-buffered tiles -- well
    # under v7x's 32 MiB scoped default even at block_b=4096.
    tb = block_b
    pad = (-B) % tb
    x_p = jnp.pad(x, ((0, pad), (0, 0))) if pad else x
    Bp = B + pad
    out = pl.pallas_call(
        kernel,
        out_shape=jax.ShapeDtypeStruct((Bp, N), x.dtype),
        grid_spec=pltpu.PrefetchScalarGridSpec(
            num_scalar_prefetch=0,
            grid=(Bp // tb,),
            in_specs=[
                pl.BlockSpec((tb, D_in), lambda i: (i, 0)),
                pl.BlockSpec((D_in, N), lambda i: (0, 0)),
                pl.BlockSpec((1, N), lambda i: (0, 0)),
            ],
            out_specs=pl.BlockSpec((tb, N), lambda i: (i, 0)),
        ),
        compiler_params=pltpu.CompilerParams(dimension_semantics=("parallel",)),
        cost_estimate=cost,
    )(x_p, w_fused, b_fused)
    return out[:B] if pad else out


def init_params(key, input_dim, num_blocks, output_dim):
    """Deterministic nn.Linear-style init: U(-1/sqrt(in), 1/sqrt(in))."""
    bound = 1.0 / (input_dim ** 0.5)
    kw, kb = jax.random.split(key)
    weights = jax.random.uniform(
        kw, (num_blocks, input_dim, output_dim), jnp.float32, -bound, bound
    )
    biases = jax.random.uniform(
        kb, (num_blocks, output_dim), jnp.float32, -bound, bound
    )
    return weights, biases


def reference(x, weights, biases):
    """Pure-JAX reference of BlocksEncoder.forward (dropout = eval identity)."""
    outs = []
    for b in range(weights.shape[0]):
        logits = x @ weights[b] + biases[b]
        outs.append(jax.nn.softmax(logits, axis=-1))
    return jnp.concatenate(outs, axis=-1)


if __name__ == "__main__":
    # Shapes consistent with the module: BlocksEncoder(input_dim=32,
    # num_blocks=4, output_dim=128, dropout=0.1) applied to x of shape (B, 32).
    INPUT_DIM, NUM_BLOCKS, OUTPUT_DIM = 32, 4, 128

    key = jax.random.PRNGKey(0)
    kx, kp, kx2 = jax.random.split(key, 3)
    weights, biases = init_params(kp, INPUT_DIM, NUM_BLOCKS, OUTPUT_DIM)
    # Fuse once at parameter-load time (hoisted out of the per-call path).
    w_fused, b_fused = fuse_params(weights, biases)
    w_fused, b_fused = jax.block_until_ready((w_fused, b_fused))

    # --- small-B (gridless) path ---
    B = 8
    x = jax.random.normal(kx, (B, INPUT_DIM), jnp.float32)
    out = blocks_encoder(
        x, w_fused, b_fused, num_blocks=NUM_BLOCKS, d_out=OUTPUT_DIM
    )
    out = jax.block_until_ready(out)
    ref = reference(x, weights, biases)
    assert out.shape == (B, NUM_BLOCKS * OUTPUT_DIM), out.shape
    assert jnp.allclose(out, ref, atol=1e-5, rtol=1e-5), "mismatch vs reference (small B)"

    # --- large-B (1-D parallel grid over B, with padding) path ---
    B2 = 200  # deliberately not a multiple of the tile to exercise padding
    x2 = jax.random.normal(kx2, (B2, INPUT_DIM), jnp.float32)
    out2 = blocks_encoder(
        x2, w_fused, b_fused, num_blocks=NUM_BLOCKS, d_out=OUTPUT_DIM, block_b=128
    )
    out2 = jax.block_until_ready(out2)
    ref2 = reference(x2, weights, biases)
    assert out2.shape == (B2, NUM_BLOCKS * OUTPUT_DIM), out2.shape
    assert jnp.allclose(out2, ref2, atol=1e-5, rtol=1e-5), "mismatch vs reference (large B)"

    print("KERNEL_OK")
</pallas_src>

<mosaic_0001>
module attributes {stable_mosaic.version = 11 : i64} {
  func.func @_blocks_encoder_kernel(%arg0: memref<8x32xf32, #tpu.memory_space<vmem>>, %arg1: memref<32x512xf32, #tpu.memory_space<vmem>>, %arg2: memref<1x512xf32, #tpu.memory_space<vmem>>, %arg3: memref<8x512xf32, #tpu.memory_space<vmem>>) attributes {dimension_semantics = [], scalar_prefetch = 0 : i64, scratch_operands = 0 : i64, tpu.core_type = #tpu.core_type<tc>} {
    %c0 = arith.constant 0 : index
    %c0_0 = arith.constant 0 : index
    %0 = vector.load %arg0[%c0, %c0_0] : memref<8x32xf32, #tpu.memory_space<vmem>>, vector<8x32xf32>
    %c0_1 = arith.constant 0 : index
    %c0_2 = arith.constant 0 : index
    %1 = vector.load %arg1[%c0_1, %c0_2] : memref<32x512xf32, #tpu.memory_space<vmem>>, vector<32x512xf32>
    %cst = arith.constant dense<0.000000e+00> : vector<8x512xf32>
    %2 = tpu.matmul %0, %1, %cst {dimension_numbers = #tpu.dot_dimension_numbers<[1], [0], [0], [1], [0, 0, 1, 1], [], []>} : vector<8x32xf32>, vector<32x512xf32>, vector<8x512xf32> -> vector<8x512xf32>
    %c0_3 = arith.constant 0 : index
    %c0_4 = arith.constant 0 : index
    %3 = vector.load %arg2[%c0_3, %c0_4] : memref<1x512xf32, #tpu.memory_space<vmem>>, vector<1x512xf32>
    %4 = vector.broadcast %3 : vector<1x512xf32> to vector<8x512xf32>
    %5 = arith.addf %2, %4 : vector<8x512xf32>
    %6 = vector.extract_strided_slice %5 {offsets = [0, 0], sizes = [8, 128], strides = [1, 1]} : vector<8x512xf32> to vector<8x128xf32>
    %cst_5 = arith.constant dense<0xFF800000> : vector<8xf32>
    %7 = vector.multi_reduction <maximumf>, %6, %cst_5 [1] : vector<8x128xf32> to vector<8xf32>
    %8 = vector.shape_cast %7 : vector<8xf32> to vector<8x1xf32>
    %9 = vector.broadcast %8 : vector<8x1xf32> to vector<8x128xf32>
    %10 = arith.subf %6, %9 : vector<8x128xf32>
    %11 = math.exp %10 : vector<8x128xf32>
    %cst_6 = arith.constant dense<0.000000e+00> : vector<8xf32>
    %12 = vector.multi_reduction <add>, %11, %cst_6 [1] : vector<8x128xf32> to vector<8xf32>
    %13 = vector.shape_cast %12 : vector<8xf32> to vector<8x1xf32>
    %14 = tpu.reciprocal %13 : vector<8x1xf32> -> vector<8x1xf32>
    %15 = vector.broadcast %14 : vector<8x1xf32> to vector<8x128xf32>
    %16 = arith.mulf %11, %15 : vector<8x128xf32>
    %c0_7 = arith.constant 0 : index
    %c0_8 = arith.constant 0 : index
    %17 = vector.load %arg3[%c0_7, %c0_8] : memref<8x512xf32, #tpu.memory_space<vmem>>, vector<8x128xf32>
    tpu.vector_store %arg3[%c0_7, %c0_8], %16 {strides = array<i32>} : memref<8x512xf32, #tpu.memory_space<vmem>>, vector<8x128xf32>,
    %18 = vector.extract_strided_slice %5 {offsets = [0, 128], sizes = [8, 128], strides = [1, 1]} : vector<8x512xf32> to vector<8x128xf32>
    %cst_9 = arith.constant dense<0xFF800000> : vector<8xf32>
    %19 = vector.multi_reduction <maximumf>, %18, %cst_9 [1] : vector<8x128xf32> to vector<8xf32>
    %20 = vector.shape_cast %19 : vector<8xf32> to vector<8x1xf32>
    %21 = vector.broadcast %20 : vector<8x1xf32> to vector<8x128xf32>
    %22 = arith.subf %18, %21 : vector<8x128xf32>
    %23 = math.exp %22 : vector<8x128xf32>
    %cst_10 = arith.constant dense<0.000000e+00> : vector<8xf32>
    %24 = vector.multi_reduction <add>, %23, %cst_10 [1] : vector<8x128xf32> to vector<8xf32>
    %25 = vector.shape_cast %24 : vector<8xf32> to vector<8x1xf32>
    %26 = tpu.reciprocal %25 : vector<8x1xf32> -> vector<8x1xf32>
    %27 = vector.broadcast %26 : vector<8x1xf32> to vector<8x128xf32>
    %28 = arith.mulf %23, %27 : vector<8x128xf32>
    %c0_11 = arith.constant 0 : index
    %c128 = arith.constant 128 : index
    %29 = vector.load %arg3[%c0_11, %c128] : memref<8x512xf32, #tpu.memory_space<vmem>>, vector<8x128xf32>
    tpu.vector_store %arg3[%c0_11, %c128], %28 {strides = array<i32>} : memref<8x512xf32, #tpu.memory_space<vmem>>, vector<8x128xf32>,
    %30 = vector.extract_strided_slice %5 {offsets = [0, 256], sizes = [8, 128], strides = [1, 1]} : vector<8x512xf32> to vector<8x128xf32>
    %cst_12 = arith.constant dense<0xFF800000> : vector<8xf32>
    %31 = vector.multi_reduction <maximumf>, %30, %cst_12 [1] : vector<8x128xf32> to vector<8xf32>
    %32 = vector.shape_cast %31 : vector<8xf32> to vector<8x1xf32>
    %33 = vector.broadcast %32 : vector<8x1xf32> to vector<8x128xf32>
    %34 = arith.subf %30, %33 : vector<8x128xf32>
    %35 = math.exp %34 : vector<8x128xf32>
    %cst_13 = arith.constant dense<0.000000e+00> : vector<8xf32>
    %36 = vector.multi_reduction <add>, %35, %cst_13 [1] : vector<8x128xf32> to vector<8xf32>
    %37 = vector.shape_cast %36 : vector<8xf32> to vector<8x1xf32>
    %38 = tpu.reciprocal %37 : vector<8x1xf32> -> vector<8x1xf32>
    %39 = vector.broadcast %38 : vector<8x1xf32> to vector<8x128xf32>
    %40 = arith.mulf %35, %39 : vector<8x128xf32>
    %c0_14 = arith.constant 0 : index
    %c256 = arith.constant 256 : index
    %41 = vector.load %arg3[%c0_14, %c256] : memref<8x512xf32, #tpu.memory_space<vmem>>, vector<8x128xf32>
    tpu.vector_store %arg3[%c0_14, %c256], %40 {strides = array<i32>} : memref<8x512xf32, #tpu.memory_space<vmem>>, vector<8x128xf32>,
    %42 = vector.extract_strided_slice %5 {offsets = [0, 384], sizes = [8, 128], strides = [1, 1]} : vector<8x512xf32> to vector<8x128xf32>
    %cst_15 = arith.constant dense<0xFF800000> : vector<8xf32>
    %43 = vector.multi_reduction <maximumf>, %42, %cst_15 [1] : vector<8x128xf32> to vector<8xf32>
    %44 = vector.shape_cast %43 : vector<8xf32> to vector<8x1xf32>
    %45 = vector.broadcast %44 : vector<8x1xf32> to vector<8x128xf32>
    %46 = arith.subf %42, %45 : vector<8x128xf32>
    %47 = math.exp %46 : vector<8x128xf32>
    %cst_16 = arith.constant dense<0.000000e+00> : vector<8xf32>
    %48 = vector.multi_reduction <add>, %47, %cst_16 [1] : vector<8x128xf32> to vector<8xf32>
    %49 = vector.shape_cast %48 : vector<8xf32> to vector<8x1xf32>
    %50 = tpu.reciprocal %49 : vector<8x1xf32> -> vector<8x1xf32>
    %51 = vector.broadcast %50 : vector<8x1xf32> to vector<8x128xf32>
    %52 = arith.mulf %47, %51 : vector<8x128xf32>
    %c0_17 = arith.constant 0 : index
    %c384 = arith.constant 384 : index
    %53 = vector.load %arg3[%c0_17, %c384] : memref<8x512xf32, #tpu.memory_space<vmem>>, vector<8x128xf32>
    tpu.vector_store %arg3[%c0_17, %c384], %52 {strides = array<i32>} : memref<8x512xf32, #tpu.memory_space<vmem>>, vector<8x128xf32>,
    return
  }
}

</mosaic_0001>

<bundles_post_ra>
// kernel: blocks_encoder.1
= control target key start
LH: loop header
LB: loop body
LE: loop exit
PB: predicated region body
PF: predicated region fallthrough
CT: control target
= control target key end

     0   :  { %8 = vsyncpa [#allocation3], 0  ;;  %s443_s0 = inlined_call_operand.hbm [shape: f32[8,32], index: 0, kind: input, shape index: {}]   ;;  %s444_s1 = inlined_call_operand.hbm [shape: f32[32,512], index: 1, kind: input, shape index: {}]   ;;  %s445_s2 = inlined_call_operand.hbm [shape: f32[1,512], index: 2, kind: input, shape index: {}]   ;;  %s446_s3 = inlined_call_operand.hbm [shape: f32[8,512], index: 3, kind: output, shape index: {}]  }
   0x1   :  { %9 = vsyncpa [#allocation6], 0 }
   0x2   :  { %10 = vsyncpa [#allocation4], 0  ;;  %s404_s12 = smov [#allocation5]  }
   0x3   :  { %s26_s13 = sshll.u32 %s404_s12, 4  ;;  %s27_s13 = int_to_ptr.vmem [resolvable:$true] %s26_s13 }
   0x4   :  { %s326_s14 = scalar_lea.vmem %s27_s13, 2048  ;;  %p331_p1 = scmp.lt.s32.totalorder %s27_s13, %s27_s13 }
   0x5   :  { %p327_p0 = scmp.ne.s32.totalorder %s27_s13, %s326_s14  ;;  %p332_p2 = scmp.lt.s32.totalorder %s326_s14, %s326_s14 }
   0x7   :  { %p333_p3 = por %p332_p2, %p331_p1 }
   0x9   :  { %p334_p4 = pnand %p333_p3, %p327_p0 }
   0xb   :  { %337 = shalt.err (!%p334_p4)
}
   0xc   :  { %s405_s15 = smov 512   ;;  %s406_s16 = smov 32  }
   0xd   :  { %32 = dma.hbm_to_vmem [thread:$0]  %s444_s1, 2048, %s27_s13, [#allocation6], %s405_s15, %s405_s15, %s406_s16  }
   0xe   :  { %s407_s19 = smov [#allocation2]   ;;  %s408_s21 = smov [#allocation7]  }
   0xf   :  { %s17_s20 = sshll.u32 %s407_s19, 4  ;;  %s39_s22 = sshll.u32 %s408_s21, 4  ;;  %s18_s20 = int_to_ptr.vmem [resolvable:$true] %s17_s20  ;;  %s40_s22 = int_to_ptr.vmem [resolvable:$true] %s39_s22 }
  0x10   :  { %s346_s23 = scalar_lea.vmem %s18_s20, 128  ;;  %p351_p6 = scmp.lt.s32.totalorder %s18_s20, %s18_s20 }
  0x11   :  { %p347_p5 = scmp.ne.s32.totalorder %s18_s20, %s346_s23  ;;  %p352_p7 = scmp.lt.s32.totalorder %s346_s23, %s346_s23 }
  0x13   :  { %p353_p8 = por %p352_p7, %p351_p6 }
  0x15   :  { %p354_p9 = pnand %p353_p8, %p347_p5 }
  0x17   :  { %357 = shalt.err (!%p354_p9)
}
  0x18   :  { %20 = dma.hbm_to_vmem [thread:$0]  %s443_s0, 128, %s18_s20, [#allocation3]  }
  0x19   :  { %s366_s26 = scalar_lea.vmem %s40_s22, 64  ;;  %p371_p11 = scmp.lt.s32.totalorder %s40_s22, %s40_s22 }
  0x1a   :  { %p367_p10 = scmp.ne.s32.totalorder %s40_s22, %s366_s26  ;;  %p372_p12 = scmp.lt.s32.totalorder %s366_s26, %s366_s26 }
  0x1c   :  { %p373_p13 = por %p372_p12, %p371_p11 }
  0x1e   :  { %p374_p0 = pnand %p373_p13, %p367_p10 }
  0x20   :  { %377 = shalt.err (!%p374_p0)
}
  0x21   :  { %42 = dma.hbm_to_vmem [thread:$0]  %s445_s2, 64, %s40_s22, [#allocation6]  }
  0x22   :  { %398 = dma.done.wait [#allocation3], 128  }
  0x23   :  { %399 = vsyncadd [#allocation3], 4294967168 }
  0x24   :  { %400 = dma.done.wait [#allocation6], 2112  }
  0x25   :  { %401 = vsyncadd [#allocation6], 4294965184  ;;  %v409_v0 = vmov 0.0   ;;  %v66_v1 = vld [vmem:[#allocation5 + $0x68] sm:$0xff]  ;;  %v68_v2 = vld [vmem:[#allocation5 + $0x78] sm:$0xff]  ;;  %vm91_vm0 = vcmask 261120   ;;  %v71_v18 = vlaneseq }
  0x26   :  { %159 = vmatprep.mubr.f32.mxu0 %v409_v0  ;;  %230 = vmatprep.mubr.f32.mxu1 %v409_v0  ;;  %v65_v3 = vld [vmem:[#allocation5 + $0x60] sm:$0xff]  ;;  %v67_v4 = vld [vmem:[#allocation5 + $0x70] sm:$0xff]  ;;  %v62_v5 = vld [vmem:[#allocation5 + $0x48] sm:$0xff]  ;;  %s410_s0 = smov [#allocation8]  }
  0x27   :  { %119 = vmatprep.subr.mxu0 %v66_v1  ;;  %190 = vmatprep.subr.mxu1 %v68_v2  ;;  %v64_v6 = vld [vmem:[#allocation5 + $0x58] sm:$0xff]  ;;  %v61_v7 = vld [vmem:[#allocation5 + $0x40] sm:$0xff]  ;;  %v63_v8 = vld [vmem:[#allocation5 + $0x50] sm:$0xff]  ;;  %v72_v19 = vshrl.u32 %v71_v18, 7  ;;  %s283_s2 = sshll.u32 %s410_s0, 4  ;;  %s284_s2 = int_to_ptr.vmem [resolvable:$true] %s283_s2 }
  0x28   :  { %120 = vmatpush1.msra.mxu0 %v65_v3  ;;  %191 = vmatpush1.msra.mxu1 %v67_v4  ;;  %v58_v9 = vld [vmem:[#allocation5 + $0x28] sm:$0xff]  ;;  %v60_v10 = vld [vmem:[#allocation5 + $0x38] sm:$0xff]  ;;  %v57_v11 = vld [vmem:[#allocation5 + $0x20] sm:$0xff]  ;;  %s378_s28 = scalar_lea.vmem %s284_s2, 512  ;;  %p383_p2 = scmp.lt.s32.totalorder %s284_s2, %s284_s2 }
  0x29   :  { %121 = vmatprep.subr.mxu0 %v62_v5  ;;  %192 = vmatprep.subr.mxu1 %v64_v6  ;;  %v59_v12 = vld [vmem:[#allocation5 + $0x30] sm:$0xff]  ;;  %v54_v13 = vld [vmem:[#allocation5 + $0x8] sm:$0xff]  ;;  %v56_v14 = vld [vmem:[#allocation5 + $0x18] sm:$0xff]  ;;  %v73_v20 = vsub.s32 0, %v72_v19  ;;  %v81_v21 = vsub.s32 2, %v72_v19  ;;  %v85_v23 = vsub.s32 3, %v72_v19  ;;  %p379_p1 = scmp.ne.s32.totalorder %s284_s2, %s378_s28  ;;  %p384_p3 = scmp.lt.s32.totalorder %s378_s28, %s378_s28 }
  0x2a   :  { %122 = vmatpush1.msra.mxu0 %v61_v7  ;;  %193 = vmatpush1.msra.mxu1 %v63_v8  ;;  %v53_v15 = vld [vmem:[#allocation5] sm:$0xff]  ;;  %v55_v16 = vld [vmem:[#allocation5 + $0x10] sm:$0xff]  ;;  %v52_v17 = vld [vmem:[#allocation2] sm:$0xff]  ;;  %v77_v26 = vsub.s32 1, %v72_v19 }
  0x2b   :  { %123 = vmatprep.subr.mxu0 %v58_v9  ;;  %194 = vmatprep.subr.mxu1 %v60_v10  ;;  %v69_v22 = vld [vmem:[#allocation7] sm:$0xf]  ;;  %p385_p4 = por %p384_p3, %p383_p2 }
  0x2c   :  { %124 = vmatpush1.msra.mxu0 %v57_v11  ;;  %195 = vmatpush1.msra.mxu1 %v59_v12  ;;  %v74_v24 = vrot.slane %v69_v22, %v73_v20  ;;  %v82_v25 = vrot.slane %v69_v22, %v81_v21  ;;  %v86_v27 = vrot.slane %v69_v22, %v85_v23 }
  0x2d   :  { %125 = vmatprep.subr.mxu0 %v54_v13  ;;  %196 = vmatprep.subr.mxu1 %v56_v14  ;;  %v78_v32 = vrot.slane %v69_v22, %v77_v26  ;;  %p386_p5 = pnand %p385_p4, %p379_p1 }
  0x2e   :  { %126 = vmatpush1.msra.mxu0 %v53_v15  ;;  %197 = vmatpush1.msra.mxu1 %v55_v16 }
  0x2f   :  { %293 = vmatmul.mubr.msk.f32.vlgmr.msra.gmra.mxu0 %vm91_vm0, %v52_v17  ;;  %294 = vmatmul.mubr.msk.f32.vlgmr.msra.gmra.mxu1 %vm91_vm0, %v52_v17 }
  0xef   :  { %v161_v28 = vpop.f32.mrf.mxu0  ;;  %v232_v29 = vpop.f32.mrf.mxu1 }
  0xf0   :  { %v162_v30 = vadd.f32 %v161_v28, %v74_v24  ;;  %v233_v31 = vadd.f32 %v232_v29, %v82_v25 }
  0xf1   :  { %v163_v33 = vpop.f32.mrf.mxu0  ;;  %v234_v34 = vpop.f32.mrf.mxu1 }
  0xf2   :  { %257 = vmax.xlane.f32.xlu1 %v233_v31  ;;  %237 = vmax.xlane.f32.xlu0 %v162_v30  ;;  %v235_v35 = vadd.f32 %v234_v34, %v86_v27  ;;  %v164_v36 = vadd.f32 %v163_v33, %v78_v32 }
  0xf6   :  { %267 = vmax.xlane.f32.xlu1 %v235_v35  ;;  %247 = vmax.xlane.f32.xlu0 %v164_v36 }
 0x17b   :  { %v258_v37 = vpop.xlane.xlu1 %257  ;;  %v238_v38 = vpop.xlane.xlu0 %237 }
 0x17c   :  { %v259_v39 = vsub.f32 %v233_v31, %v258_v37  ;;  %v239_v40 = vsub.f32 %v162_v30, %v238_v38 }
 0x17e   :  { %v240_v41 = vmul.f32 1.442695, %v239_v40  ;;  %v260_v44 = vmul.f32 1.442695, %v259_v39 }
 0x17f   :  { %v268_v42 = vpop.xlane.xlu1 %267  ;;  %v248_v43 = vpop.xlane.xlu0 %247 }
 0x180   :  { %v249_v45 = vsub.f32 %v164_v36, %v248_v43  ;;  %302 = vpow2.f32 %v240_v41  ;;  %v269_v46 = vsub.f32 %v235_v35, %v268_v42 }
 0x181   :  { %304 = vpow2.f32 %v260_v44 }
 0x182   :  { %v250_v47 = vmul.f32 1.442695, %v249_v45  ;;  %v270_v48 = vmul.f32 1.442695, %v269_v46 }
 0x184   :  { %306 = vpow2.f32 %v250_v47 }
 0x185   :  { %308 = vpow2.f32 %v270_v48 }
 0x18d   :  { %v303_v49 = vpop.eup %302 }
 0x18e   :  { %242 = vadd.xlane.f32.xlu0 %v303_v49  ;;  %v305_v50 = vpop.eup %304 }
 0x191   :  { %v307_v51 = vpop.eup %306 }
 0x192   :  { %262 = vadd.xlane.f32.xlu0 %v305_v50  ;;  %252 = vadd.xlane.f32.xlu1 %v307_v51  ;;  %v309_v52 = vpop.eup %308 }
 0x196   :  { %272 = vadd.xlane.f32.xlu1 %v309_v52 }
 0x217   :  { %v243_v53 = vpop.xlane.xlu0 %242 }
 0x218   :  { %310 = vrcp.f32 %v243_v53 }
 0x21b   :  { %v253_v54 = vpop.xlane.xlu1 %252  ;;  %v263_v55 = vpop.xlane.xlu0 %262 }
 0x21c   :  { %312 = vrcp.f32 %v253_v54 }
 0x21d   :  { %314 = vrcp.f32 %v263_v55 }
 0x21f   :  { %v273_v56 = vpop.xlane.xlu1 %272 }
 0x220   :  { %316 = vrcp.f32 %v273_v56 }
 0x225   :  { %v311_v57 = vpop.eup %310 }
 0x226   :  { %v245_v58 = vmul.f32 %v311_v57, %v303_v49 }
 0x228   :  { %246 = vst [vmem:[#allocation8] sm:$0xff] %v245_v58 }
 0x229   :  { %v313_v59 = vpop.eup %312 }
 0x22a   :  { %v315_v60 = vpop.eup %314  ;;  %v255_v61 = vmul.f32 %v313_v59, %v307_v51 }
 0x22b   :  { %v265_v62 = vmul.f32 %v315_v60, %v305_v50 }
 0x22c   :  { %256 = vst [vmem:[#allocation8 + $0x8] sm:$0xff] %v255_v61 }
 0x22d   :  { %v317_v63 = vpop.eup %316  ;;  %266 = vst [vmem:[#allocation8 + $0x10] sm:$0xff] %v265_v62 }
 0x22e   :  { %v275_v0 = vmul.f32 %v317_v63, %v309_v52 }
 0x230   :  { %276 = vst [vmem:[#allocation8 + $0x18] sm:$0xff] %v275_v0 }
 0x231   :  { %389 = shalt.err (!%p386_p5)
}
 0x232   :  { %286 = dma.vmem_to_hbm [thread:$0]  %s284_s2, 512, %s446_s3, [#allocation4]  }
 0x233   :  { %402 = dma.done.wait [#allocation4], 512  }
 0x234   :  { %403 = vsyncadd [#allocation4], 4294966784 }
 0x235   :  { %290 = vsyncpa [#allocation3], 1 }
 0x236   :  { %291 = vsyncpa [#allocation6], 1 }
 0x237   :  { %292 = vsyncpa [#allocation4], 1 }

</bundles_post_ra>
